<compile_context>
chip_gen: v6e
topology: v6e:2x2x1
jax: 0.10.0
libtpu: 0.0.40
codegen_flags: <defaults>
</compile_context>

<pallas_src>
import numpy as np
import jax
import jax.numpy as jnp
from jax.experimental import pallas as pl
from jax.experimental.pallas import tpu as pltpu

N_TASKS = 3   # num_tasks
P_MESA = 4    # mesa_parameter_size
D_IN = 16
HID = 32
D_OUT = 8
OUT_PAD = 128                                   # lane-dense output width
K1 = (P_MESA + 1) * D_IN + (P_MESA + 1)         # 85  : stacked K for layer 1
K2 = (P_MESA + 1) * HID + (P_MESA + 1)          # 165 : stacked K for layer 2


def _mtms_kernel(x_ref, ce_ref, w1_ref, w2_ref, out_ref):
    x = x_ref[...]                    # (tile, D_IN)
    ce = ce_ref[...]                  # (tile, P+1); column 0 is the constant 1.0

    # Layer 1: one K-stacked MXU matmul (base W, P weight deltas, base bias, P bias deltas).
    x_aug = jnp.concatenate(
        [x] + [ce[:, j:j + 1] * x for j in range(1, P_MESA + 1)] + [ce],
        axis=1)                                                   # (tile, K1)
    h = jnp.maximum(
        jnp.dot(x_aug, w1_ref[...], preferred_element_type=jnp.float32), 0.0)

    # Layer 2: same trick; output is lane-dense (columns D_OUT..127 of w2 are zero).
    h_aug = jnp.concatenate(
        [h] + [ce[:, j:j + 1] * h for j in range(1, P_MESA + 1)] + [ce],
        axis=1)                                                   # (tile, K2)
    out_ref[...] = jnp.dot(h_aug, w2_ref[...], preferred_element_type=jnp.float32)


def _round_up(a, b):
    return (a + b - 1) // b * b


def mtms_forward(x, tasks, kernel_params, *, tile_n=2048):
    w1_stack, w2_stack, mesa = kernel_params
    n = x.shape[0]
    tasks = tasks.astype(jnp.int32)

    # Per-row mesa coefficients gathered in XLA (cheap); prepend the constant 1 used by
    # the K-stacked matmul (base-weight / base-bias columns).
    coeff = mesa[tasks]                                               # (n, P)
    ce = jnp.concatenate([jnp.ones((n, 1), jnp.float32), coeff], axis=1)   # (n, P+1)

    # Row tiling: big tiles amortize per-step overhead; prefer >= 2 grid steps when the
    # row count allows so the "parallel" axis can shard across both v7x TensorCores.
    n8 = _round_up(n, 8)
    tile = int(min(tile_n, n8))
    if 8 < n8 <= tile_n:
        tile = _round_up((n8 + 1) // 2, 8)
    n_pad = _round_up(n, tile)
    if n_pad != n:
        x_in = jnp.pad(x, ((0, n_pad - n), (0, 0)))
        ce_in = jnp.pad(ce, ((0, n_pad - n), (0, 0)))
    else:
        x_in, ce_in = x, ce

    y_full = pl.pallas_call(
        _mtms_kernel,
        out_shape=jax.ShapeDtypeStruct((n_pad, OUT_PAD), jnp.float32),
        grid=(n_pad // tile,),
        in_specs=[
            pl.BlockSpec((tile, D_IN), lambda i: (i, 0)),          # x rows
            pl.BlockSpec((tile, P_MESA + 1), lambda i: (i, 0)),    # [1, mesa coeff] rows
            pl.BlockSpec((K1, HID), lambda i: (0, 0)),             # packed layer-1 slab
            pl.BlockSpec((K2, OUT_PAD), lambda i: (0, 0)),         # packed layer-2 slab
        ],
        out_specs=pl.BlockSpec((tile, OUT_PAD), lambda i: (i, 0)),
        compiler_params=pltpu.CompilerParams(
            dimension_semantics=("parallel",),
            vmem_limit_bytes=48 * 1024 * 1024),   # headroom, stays under v7x's 64 MiB/TC
    )(x_in, ce_in, w1_stack, w2_stack)

    y = y_full[:n, :D_OUT]

    # Torch output ordering: task groups sorted by first row index of the group, rows
    # inside a group keep their original relative order.  Composite-key argsort avoids
    # depending on a `stable=` kwarg.
    idx = jnp.arange(n, dtype=jnp.int32)
    first_of_task = jnp.full((N_TASKS,), n, dtype=jnp.int32).at[tasks].min(idx)
    perm = jnp.argsort(first_of_task[tasks] * n + idx)
    return y[perm]


def init_params(key):
    ks = jax.random.split(key, 13)
    # Base model (PyTorch Linear convention: weight is (out, in)).
    W1 = 0.3 * jax.random.normal(ks[0], (HID, D_IN), jnp.float32)
    b1 = 0.3 * jax.random.normal(ks[1], (HID,), jnp.float32)
    W2 = 0.3 * jax.random.normal(ks[2], (D_OUT, HID), jnp.float32)
    b2 = 0.3 * jax.random.normal(ks[3], (D_OUT,), jnp.float32)
    # MetaModule: one Linear(P_MESA -> numel(param), bias=True) per base parameter.
    MW_w1 = 0.05 * jax.random.normal(ks[4], (HID * D_IN, P_MESA), jnp.float32)
    Mb_w1 = 0.05 * jax.random.normal(ks[5], (HID * D_IN,), jnp.float32)
    MW_b1 = 0.05 * jax.random.normal(ks[6], (HID, P_MESA), jnp.float32)
    Mb_b1 = 0.05 * jax.random.normal(ks[7], (HID,), jnp.float32)
    MW_w2 = 0.05 * jax.random.normal(ks[8], (D_OUT * HID, P_MESA), jnp.float32)
    Mb_w2 = 0.05 * jax.random.normal(ks[9], (D_OUT * HID,), jnp.float32)
    MW_b2 = 0.05 * jax.random.normal(ks[10], (D_OUT, P_MESA), jnp.float32)
    Mb_b2 = 0.05 * jax.random.normal(ks[11], (D_OUT,), jnp.float32)
    # MesaModule: (num_tasks, mesa_parameter_size) parameter table.
    mesa = 0.5 * jax.random.normal(ks[12], (N_TASKS, P_MESA), jnp.float32)

    torch_like = dict(W1=W1, b1=b1, W2=W2, b2=b2,
                      MW_w1=MW_w1, Mb_w1=Mb_w1, MW_b1=MW_b1, Mb_b1=Mb_b1,
                      MW_w2=MW_w2, Mb_w2=Mb_w2, MW_b2=MW_b2, Mb_b2=Mb_b2,
                      mesa=mesa)

    # Kernel layout (glue, built once in XLA): fold the task-independent meta bias into
    # the base weights and pack everything into one K-stacked slab per layer, row order
    # matching the in-kernel X_aug / H_aug column order:
    #   [W_base (in,out); dW_0..dW_{P-1}; b_base (1,out); db_0..db_{P-1}]
    w1b = (W1 + Mb_w1.reshape(HID, D_IN)).T                                    # (D_IN, HID)
    mw1 = jnp.transpose(MW_w1.reshape(HID, D_IN, P_MESA), (2, 1, 0))           # (P, D_IN, HID)
    w1_stack = jnp.concatenate(
        [w1b, mw1.reshape(P_MESA * D_IN, HID),
         (b1 + Mb_b1).reshape(1, HID), MW_b1.T], axis=0)                       # (K1, HID)

    w2b = (W2 + Mb_w2.reshape(D_OUT, HID)).T                                   # (HID, D_OUT)
    mw2 = jnp.transpose(MW_w2.reshape(D_OUT, HID, P_MESA), (2, 1, 0))          # (P, HID, D_OUT)
    w2_small = jnp.concatenate(
        [w2b, mw2.reshape(P_MESA * HID, D_OUT),
         (b2 + Mb_b2).reshape(1, D_OUT), MW_b2.T], axis=0)                     # (K2, D_OUT)
    w2_stack = jnp.pad(w2_small, ((0, 0), (0, OUT_PAD - D_OUT)))               # (K2, 128)

    kernel_params = (w1_stack, w2_stack, mesa)
    return torch_like, kernel_params


def torch_reference(x, tasks, tp):
    """Pure numpy mirror of MtMs.forward (per-task loop + sort by first row index)."""
    xn, tn = np.asarray(x), np.asarray(tasks)
    W1, b1 = np.asarray(tp["W1"]), np.asarray(tp["b1"])
    W2, b2 = np.asarray(tp["W2"]), np.asarray(tp["b2"])
    parts = []
    for tid in np.unique(tn):
        rows = np.nonzero(tn == tid)[0]
        mp = np.asarray(tp["mesa"])[tid]
        dW1 = (mp @ np.asarray(tp["MW_w1"]).T + np.asarray(tp["Mb_w1"])).reshape(HID, D_IN)
        db1 = mp @ np.asarray(tp["MW_b1"]).T + np.asarray(tp["Mb_b1"])
        dW2 = (mp @ np.asarray(tp["MW_w2"]).T + np.asarray(tp["Mb_w2"])).reshape(D_OUT, HID)
        db2 = mp @ np.asarray(tp["MW_b2"]).T + np.asarray(tp["Mb_b2"])
        h = np.maximum(xn[rows] @ (W1 + dW1).T + (b1 + db1), 0.0)
        yt = h @ (W2 + dW2).T + (b2 + db2)
        parts.append((yt, rows))
    parts.sort(key=lambda pr: pr[1][0])
    return np.concatenate([pr[0] for pr in parts], axis=0)


if __name__ == "__main__":
    key = jax.random.PRNGKey(0)
    k_x, k_t, k_p = jax.random.split(key, 3)
    N = 8
    x = jax.random.normal(k_x, (N, D_IN), jnp.float32)
    tasks = jax.random.randint(k_t, (N,), 0, N_TASKS, jnp.int32)
    torch_like, kparams = init_params(k_p)

    y = jax.block_until_ready(mtms_forward(x, tasks, kparams))

    y_ref = torch_reference(x, tasks, torch_like)
    if not np.allclose(np.asarray(y), y_ref, atol=1e-4, rtol=1e-4):
        raise AssertionError("Pallas kernel output does not match reference")
    print("KERNEL_OK")
</pallas_src>

<mosaic_0001>
module attributes {stable_mosaic.version = 11 : i64} {
  func.func @_mtms_kernel(%arg0: i32, %arg1: memref<8x16xf32, #tpu.memory_space<vmem>>, %arg2: memref<8x5xf32, #tpu.memory_space<vmem>>, %arg3: memref<85x32xf32, #tpu.memory_space<vmem>>, %arg4: memref<165x128xf32, #tpu.memory_space<vmem>>, %arg5: memref<8x128xf32, #tpu.memory_space<vmem>>) attributes {dimension_semantics = [#tpu.dimension_semantics<parallel>], iteration_bounds = array<i64: 1>, scalar_prefetch = 0 : i64, scratch_operands = 0 : i64, tpu.core_type = #tpu.core_type<tc>, window_params = [{transform_indices = @transform_0, window_bounds = array<i64: 8, 16>}, {transform_indices = @transform_1, window_bounds = array<i64: 8, 5>}, {pipeline_mode = #tpu.pipeline_mode<synchronous>, transform_indices = @transform_2, window_bounds = array<i64: 85, 32>}, {pipeline_mode = #tpu.pipeline_mode<synchronous>, transform_indices = @transform_3, window_bounds = array<i64: 165, 128>}, {transform_indices = @transform_4, window_bounds = array<i64: 8, 128>}]} {
    %c0 = arith.constant 0 : index
    %c0_0 = arith.constant 0 : index
    %0 = vector.load %arg1[%c0, %c0_0] : memref<8x16xf32, #tpu.memory_space<vmem>>, vector<8x16xf32>
    %c0_1 = arith.constant 0 : index
    %c0_2 = arith.constant 0 : index
    %1 = vector.load %arg2[%c0_1, %c0_2] : memref<8x5xf32, #tpu.memory_space<vmem>>, vector<8x5xf32>
    %2 = vector.extract_strided_slice %1 {offsets = [0, 1], sizes = [8, 1], strides = [1, 1]} : vector<8x5xf32> to vector<8x1xf32>
    %3 = vector.broadcast %2 : vector<8x1xf32> to vector<8x16xf32>
    %4 = arith.mulf %3, %0 : vector<8x16xf32>
    %5 = vector.extract_strided_slice %1 {offsets = [0, 2], sizes = [8, 1], strides = [1, 1]} : vector<8x5xf32> to vector<8x1xf32>
    %6 = vector.broadcast %5 : vector<8x1xf32> to vector<8x16xf32>
    %7 = arith.mulf %6, %0 : vector<8x16xf32>
    %8 = vector.extract_strided_slice %1 {offsets = [0, 3], sizes = [8, 1], strides = [1, 1]} : vector<8x5xf32> to vector<8x1xf32>
    %9 = vector.broadcast %8 : vector<8x1xf32> to vector<8x16xf32>
    %10 = arith.mulf %9, %0 : vector<8x16xf32>
    %11 = vector.extract_strided_slice %1 {offsets = [0, 4], sizes = [8, 1], strides = [1, 1]} : vector<8x5xf32> to vector<8x1xf32>
    %12 = vector.broadcast %11 : vector<8x1xf32> to vector<8x16xf32>
    %13 = arith.mulf %12, %0 : vector<8x16xf32>
    %14 = tpu.concatenate %0, %4, %7, %10, %13, %1 in 1 : vector<8x16xf32>, vector<8x16xf32>, vector<8x16xf32>, vector<8x16xf32>, vector<8x16xf32>, vector<8x5xf32> -> vector<8x85xf32>
    %c0_3 = arith.constant 0 : index
    %c0_4 = arith.constant 0 : index
    %15 = vector.load %arg3[%c0_3, %c0_4] : memref<85x32xf32, #tpu.memory_space<vmem>>, vector<85x32xf32>
    %cst = arith.constant dense<0.000000e+00> : vector<8x32xf32>
    %16 = tpu.matmul %14, %15, %cst {dimension_numbers = #tpu.dot_dimension_numbers<[1], [0], [0], [1], [0, 0, 1, 1], [], []>} : vector<8x85xf32>, vector<85x32xf32>, vector<8x32xf32> -> vector<8x32xf32>
    %cst_5 = arith.constant 0.000000e+00 : f32
    %17 = vector.broadcast %cst_5 : f32 to vector<8x32xf32>
    %18 = arith.maximumf %16, %17 : vector<8x32xf32>
    %19 = vector.extract_strided_slice %1 {offsets = [0, 1], sizes = [8, 1], strides = [1, 1]} : vector<8x5xf32> to vector<8x1xf32>
    %20 = vector.broadcast %19 : vector<8x1xf32> to vector<8x32xf32>
    %21 = arith.mulf %20, %18 : vector<8x32xf32>
    %22 = vector.extract_strided_slice %1 {offsets = [0, 2], sizes = [8, 1], strides = [1, 1]} : vector<8x5xf32> to vector<8x1xf32>
    %23 = vector.broadcast %22 : vector<8x1xf32> to vector<8x32xf32>
    %24 = arith.mulf %23, %18 : vector<8x32xf32>
    %25 = vector.extract_strided_slice %1 {offsets = [0, 3], sizes = [8, 1], strides = [1, 1]} : vector<8x5xf32> to vector<8x1xf32>
    %26 = vector.broadcast %25 : vector<8x1xf32> to vector<8x32xf32>
    %27 = arith.mulf %26, %18 : vector<8x32xf32>
    %28 = vector.extract_strided_slice %1 {offsets = [0, 4], sizes = [8, 1], strides = [1, 1]} : vector<8x5xf32> to vector<8x1xf32>
    %29 = vector.broadcast %28 : vector<8x1xf32> to vector<8x32xf32>
    %30 = arith.mulf %29, %18 : vector<8x32xf32>
    %31 = tpu.concatenate %18, %21, %24, %27, %30, %1 in 1 : vector<8x32xf32>, vector<8x32xf32>, vector<8x32xf32>, vector<8x32xf32>, vector<8x32xf32>, vector<8x5xf32> -> vector<8x165xf32>
    %c0_6 = arith.constant 0 : index
    %c0_7 = arith.constant 0 : index
    %32 = vector.load %arg4[%c0_6, %c0_7] : memref<165x128xf32, #tpu.memory_space<vmem>>, vector<165x128xf32>
    %cst_8 = arith.constant dense<0.000000e+00> : vector<8x128xf32>
    %33 = tpu.matmul %31, %32, %cst_8 {dimension_numbers = #tpu.dot_dimension_numbers<[1], [0], [0], [1], [0, 0, 1, 1], [], []>} : vector<8x165xf32>, vector<165x128xf32>, vector<8x128xf32> -> vector<8x128xf32>
    %c0_9 = arith.constant 0 : index
    %c0_10 = arith.constant 0 : index
    %34 = vector.load %arg5[%c0_9, %c0_10] : memref<8x128xf32, #tpu.memory_space<vmem>>, vector<8x128xf32>
    tpu.vector_store %arg5[%c0_9, %c0_10], %33 {strides = array<i32>} : memref<8x128xf32, #tpu.memory_space<vmem>>, vector<8x128xf32>,
    return
  }
  func.func @transform_0(%arg0: i32) -> (i32, i32) {
    %c0_i32 = arith.constant 0 : i32
    %c0_i32_0 = arith.constant 0 : i32
    return %arg0, %c0_i32 : i32, i32
  }
  func.func @transform_1(%arg0: i32) -> (i32, i32) {
    %c0_i32 = arith.constant 0 : i32
    %c0_i32_0 = arith.constant 0 : i32
    return %arg0, %c0_i32 : i32, i32
  }
  func.func @transform_2(%arg0: i32) -> (i32, i32) {
    %c0_i32 = arith.constant 0 : i32
    %c0_i32_0 = arith.constant 0 : i32
    %c0_i32_1 = arith.constant 0 : i32
    return %c0_i32, %c0_i32_0 : i32, i32
  }
  func.func @transform_3(%arg0: i32) -> (i32, i32) {
    %c0_i32 = arith.constant 0 : i32
    %c0_i32_0 = arith.constant 0 : i32
    %c0_i32_1 = arith.constant 0 : i32
    return %c0_i32, %c0_i32_0 : i32, i32
  }
  func.func @transform_4(%arg0: i32) -> (i32, i32) {
    %c0_i32 = arith.constant 0 : i32
    %c0_i32_0 = arith.constant 0 : i32
    return %arg0, %c0_i32 : i32, i32
  }
}

</mosaic_0001>

<bundles_post_ra>
// kernel: tpu_custom_call.1
= control target key start
LH: loop header
LB: loop body
LE: loop exit
PB: predicated region body
PF: predicated region fallthrough
CT: control target
= control target key end

     0   :  { %9 = vsyncpa [#allocation3], 0  ;;  %s573_s0 = inlined_call_operand.vmem [shape: f32[8,16], index: 0, kind: input, shape index: {}]   ;;  %s574_s1 = inlined_call_operand.vmem [shape: f32[8,5], index: 1, kind: input, shape index: {}]   ;;  %s575_s2 = inlined_call_operand.vmem [shape: f32[85,32], index: 2, kind: input, shape index: {}]   ;;  %s576_s3 = inlined_call_operand.hbm [shape: f32[165,128], index: 3, kind: input, shape index: {}]   ;;  %s577_s4 = inlined_call_operand.hbm [shape: f32[8,128], index: 4, kind: output, shape index: {}]  }
   0x1   :  { %10 = vsyncpa [#allocation4], 0  ;;  %s418_s15 = smov [#allocation2]  }
   0x2   :  { %s22_s16 = sshll.u32 %s418_s15, 4  ;;  %s23_s16 = int_to_ptr.vmem [resolvable:$true] %s22_s16 }
   0x3   :  { %s382_s17 = scalar_lea.vmem %s23_s16, 2688  ;;  %p387_p1 = scmp.lt.s32.totalorder %s23_s16, %s23_s16 }
   0x4   :  { %p383_p0 = scmp.ne.s32.totalorder %s23_s16, %s382_s17  ;;  %p388_p2 = scmp.lt.s32.totalorder %s382_s17, %s382_s17 }
   0x6   :  { %p389_p3 = por %p388_p2, %p387_p1 }
   0x8   :  { %p390_p4 = pnand %p389_p3, %p383_p0 }
   0xa   :  { %393 = shalt.err (!%p390_p4)
}
   0xb   :  { %s419_s18 = smov 128   ;;  %s420_s19 = smov 8  }
   0xc   :  { %28 = dma.hbm_to_vmem [thread:$0]  %s576_s3, 2688, %s23_s16, [#allocation3], %s419_s18, %s419_s18, %s420_s19  }
   0xd   :  { %414 = dma.done.wait [#allocation3], 2688  }
   0xe   :  { %415 = vsyncadd [#allocation3], 4294964608  ;;  %v421_v0 = vmov 1   ;;  %v422_v1 = vmov 3   ;;  %v465_v2 = vld [vmem:[%s574_s1] sm:$0xff]  ;;  %v423_v3 = vmov 2  }
   0xf   :  { %369 = vset.pattern.permute.xlu0 %v421_v0  ;;  %371 = vset.pattern.permute.xlu1 %v422_v1  ;;  %v424_v4 = vmov 4   ;;  %v94_v5 = vld [vmem:[%s575_s2 + $0x50] sm:$0x1f]  ;;  %vm99_vm0 = vcmask 1044480   ;;  %v425_v6 = vmov 0.0   ;;  %v93_v7 = vld [vmem:[%s575_s2 + $0x48] sm:$0xff] }
  0x10   :  { %36 = vperm.xlu0 %369, %v465_v2   ;;  %46 = vperm.xlu1 %371, %v465_v2   ;;  %v92_v8 = vld [vmem:[%s575_s2 + $0x40] sm:$0xff]  ;;  %v91_v9 = vld [vmem:[%s575_s2 + $0x38] sm:$0xff]  ;;  %v90_v10 = vld [vmem:[%s575_s2 + $0x30] sm:$0xff]  ;;  %vm426_vm1 = vmmov 0   ;;  %s427_s20 = smov 16   ;;  %s430_s21 = smov 80  }
  0x11   :  { %328 = vmatprep.subr.mxu0 %v425_v6  ;;  %226 = vmatprep.subr.mxu1 %v425_v6  ;;  %v89_v11 = vld [vmem:[%s575_s2 + $0x28] sm:$0xff]  ;;  %v88_v12 = vld [vmem:[%s575_s2 + $0x20] sm:$0xff]  ;;  %v87_v13 = vld [vmem:[%s575_s2 + $0x18] sm:$0xff]  ;;  %s431_s22 = smov 64   ;;  %vm74_vm2 = vcmask 130048   ;;  %vm76_vm3 = vcmask 261120  }
  0x12   :  { %329 = vmatpush3.msk.msra.mxu0 %vm99_vm0, %v94_v5  ;;  %v86_v14 = vld [vmem:[%s575_s2 + $0x10] sm:$0xff]  ;;  %v85_v15 = vld [vmem:[%s575_s2 + $0x8] sm:$0xff]  ;;  %v32_v16 = vld [vmem:[%s573_s0] sm:$0xff]  ;;  %350 = vmatprep.mubr.msk.f32.mxu0 %vm426_vm1, %v425_v6  ;;  %s428_s0 = smov 48   ;;  %vm78_vm4 = vcmask 392192   ;;  %vm80_vm5 = vcmask 523264  }
  0x13   :  { %330 = vmatprep.subr.mxu0 %v425_v6  ;;  %v84_v17 = vld [vmem:[%s575_s2] sm:$0xff]  ;;  %s429_s2 = smov 32   ;;  %vm82_vm6 = vcmask 654336   ;;  %vm95_vm7 = vcmask 695296   ;;  %v213_v36 = vld [vmem:[#allocation2 + $0x78] sm:$0xff]  ;;  %v212_v37 = vld [vmem:[#allocation2 + $0x70] sm:$0xff] }
  0x14   :  { %370 = vset.pattern.permute.xlu0 %v423_v3  ;;  %372 = vset.pattern.permute.xlu1 %v424_v4  ;;  %v211_v38 = vld [vmem:[#allocation2 + $0x68] sm:$0xff]  ;;  %v210_v39 = vld [vmem:[#allocation2 + $0x60] sm:$0xff]  ;;  %v209_v40 = vld [vmem:[#allocation2 + $0x58] sm:$0xff]  ;;  %s432_s23 = smov 96   ;;  %vm195_vm8 = vcmask 785408   ;;  %vm219_vm9 = vcmask 302080  }
  0x15   :  { %41 = vperm.xlu0 %370, %v465_v2   ;;  %51 = vperm.xlu1 %372, %v465_v2   ;;  %v208_v41 = vld [vmem:[#allocation2 + $0x50] sm:$0xff]  ;;  %v207_v42 = vld [vmem:[#allocation2 + $0x48] sm:$0xff]  ;;  %v206_v43 = vld [vmem:[#allocation2 + $0x40] sm:$0xff]  ;;  %s433_s3 = smov [#allocation5]  }
  0x16   :  { %331 = vmatpush3.msra.mxu0 %v93_v7  ;;  %227 = vmatpush1.msra.mxu1 %v213_v36  ;;  %v205_v44 = vld [vmem:[#allocation2 + $0x38] sm:$0xff]  ;;  %v204_v45 = vld [vmem:[#allocation2 + $0x30] sm:$0xff]  ;;  %v203_v46 = vld [vmem:[#allocation2 + $0x28] sm:$0xff]  ;;  %s303_s24 = sshll.u32 %s433_s3, 4  ;;  %s304_s24 = int_to_ptr.vmem [resolvable:$true] %s303_s24 }
  0x17   :  { %332 = vmatprep.subr.mxu0 %v425_v6  ;;  %228 = vmatprep.subr.mxu1 %v425_v6  ;;  %v202_v47 = vld [vmem:[#allocation2 + $0x20] sm:$0xff]  ;;  %v201_v48 = vld [vmem:[#allocation2 + $0x18] sm:$0xff]  ;;  %v200_v49 = vld [vmem:[#allocation2 + $0x10] sm:$0xff]  ;;  %s394_s1 = scalar_lea.vmem %s304_s24, 128  ;;  %p399_p6 = scmp.lt.s32.totalorder %s304_s24, %s304_s24 }
  0x18   :  { %333 = vmatpush3.msra.mxu0 %v92_v8  ;;  %229 = vmatpush1.msra.mxu1 %v212_v37  ;;  %v199_v50 = vld [vmem:[#allocation2 + $0x8] sm:$0xff]  ;;  %v198_v51 = vld [vmem:[#allocation2] sm:$0xff]  ;;  %v217_v53 = vld [vmem:[#allocation2 + $0x98] sm:$0xff]  ;;  %p395_p5 = scmp.ne.s32.totalorder %s304_s24, %s394_s1  ;;  %p400_p7 = scmp.lt.s32.totalorder %s394_s1, %s394_s1 }
  0x19   :  { %373 = vset.pattern.permute.xlu0 %v424_v4  ;;  %334 = vmatprep.subr.mxu0 %v425_v6  ;;  %v218_v52 = vld [vmem:[#allocation2 + $0xa0] sm:$0x1f]  ;;  %v216_v54 = vld [vmem:[#allocation2 + $0x90] sm:$0xff]  ;;  %v215_v55 = vld [vmem:[#allocation2 + $0x88] sm:$0xff] }
  0x1a   :  { %335 = vmatpush3.msra.mxu0 %v91_v9  ;;  %230 = vmatprep.subr.mxu1 %v425_v6  ;;  %v214_v56 = vld [vmem:[#allocation2 + $0x80] sm:$0xff]  ;;  %p401_p8 = por %p400_p7, %p399_p6 }
  0x1b   :  { %336 = vmatprep.subr.mxu0 %v425_v6  ;;  %231 = vmatpush1.msra.mxu1 %v211_v38 }
  0x1c   :  { %337 = vmatpush3.msra.mxu0 %v90_v10  ;;  %232 = vmatprep.subr.mxu1 %v425_v6  ;;  %p402_p9 = pnand %p401_p8, %p395_p5 }
  0x1d   :  { %338 = vmatprep.subr.mxu0 %v425_v6  ;;  %233 = vmatpush1.msra.mxu1 %v210_v39 }
  0x1e   :  { %339 = vmatpush3.msra.mxu0 %v89_v11  ;;  %234 = vmatprep.subr.mxu1 %v425_v6 }
  0x1f   :  { %340 = vmatprep.subr.mxu0 %v425_v6  ;;  %235 = vmatpush1.msra.mxu1 %v209_v40 }
  0x20   :  { %341 = vmatpush3.msra.mxu0 %v88_v12  ;;  %236 = vmatprep.subr.mxu1 %v425_v6 }
  0x21   :  { %342 = vmatprep.subr.mxu0 %v425_v6  ;;  %237 = vmatpush1.msra.mxu1 %v208_v41 }
  0x22   :  { %343 = vmatpush3.msra.mxu0 %v87_v13  ;;  %238 = vmatprep.subr.mxu1 %v425_v6 }
  0x23   :  { %344 = vmatprep.subr.mxu0 %v425_v6  ;;  %239 = vmatpush1.msra.mxu1 %v207_v42 }
  0x24   :  { %345 = vmatpush3.msra.mxu0 %v86_v14  ;;  %240 = vmatprep.subr.mxu1 %v425_v6 }
  0x25   :  { %346 = vmatprep.subr.mxu0 %v425_v6  ;;  %241 = vmatpush1.msra.mxu1 %v206_v43 }
  0x26   :  { %347 = vmatpush3.msra.mxu0 %v85_v15  ;;  %242 = vmatprep.subr.mxu1 %v425_v6 }
  0x27   :  { %348 = vmatprep.subr.mxu0 %v425_v6  ;;  %243 = vmatpush1.msra.mxu1 %v205_v44 }
  0x28   :  { %349 = vmatpush3.msra.mxu0 %v84_v17  ;;  %244 = vmatprep.subr.mxu1 %v425_v6 }
  0x29   :  { %245 = vmatpush1.msra.mxu1 %v204_v45 }
  0x2a   :  { %246 = vmatprep.subr.mxu1 %v425_v6 }
  0x2b   :  { %247 = vmatpush1.msra.mxu1 %v203_v46 }
  0x2c   :  { %248 = vmatprep.subr.mxu1 %v425_v6 }
  0x2d   :  { %249 = vmatpush1.msra.mxu1 %v202_v47 }
  0x2e   :  { %250 = vmatprep.subr.mxu1 %v425_v6 }
  0x2f   :  { %251 = vmatpush1.msra.mxu1 %v201_v48 }
  0x30   :  { %252 = vmatprep.subr.mxu1 %v425_v6 }
  0x31   :  { %253 = vmatpush1.msra.mxu1 %v200_v49 }
  0x32   :  { %254 = vmatprep.subr.mxu1 %v425_v6 }
  0x33   :  { %255 = vmatpush1.msra.mxu1 %v199_v50 }
  0x34   :  { %256 = vmatprep.subr.mxu1 %v425_v6 }
  0x35   :  { %257 = vmatpush1.msra.mxu1 %v198_v51 }
  0x36   :  { %280 = vmatprep.subr.mxu1 %v425_v6 }
  0x37   :  { %314 = vmatpush2.msk.msra.mxu1 %vm99_vm0, %v218_v52 }
  0x38   :  { %282 = vmatprep.subr.mxu1 %v425_v6 }
  0x39   :  { %283 = vmatpush2.msra.mxu1 %v217_v53 }
  0x3a   :  { %284 = vmatprep.subr.mxu1 %v425_v6 }
  0x3b   :  { %285 = vmatpush2.msra.mxu1 %v216_v54 }
  0x3c   :  { %286 = vmatprep.subr.mxu1 %v425_v6 }
  0x3d   :  { %287 = vmatpush2.msra.mxu1 %v215_v55 }
  0x3e   :  { %288 = vmatprep.subr.mxu1 %v425_v6 }
  0x3f   :  { %289 = vmatpush2.msra.mxu1 %v214_v56 }
  0x8b   :  { %v520_v18 = vpop.permute.xlu0 %36  ;;  %v522_v19 = vpop.permute.xlu1 %46 }
  0x8c   :  { %v39_v20 = vmul.f32 %v520_v18, %v32_v16  ;;  %v49_v21 = vmul.f32 %v522_v19, %v32_v16 }
  0x8e   :  { %56 = vrot.lane.b32.xlu1 %v39_v20, %s427_s20 }
  0x90   :  { %v527_v22 = vpop.permute.xlu0 %41  ;;  %v529_v23 = vpop.permute.xlu1 %51 }
  0x91   :  { %v44_v24 = vmul.f32 %v527_v22, %v32_v16  ;;  %v54_v25 = vmul.f32 %v529_v23, %v32_v16 }
  0x92   :  { %64 = vrot.lane.b32.xlu1 %v49_v21, %s428_s0 }
  0x93   :  { %60 = vrot.lane.b32.xlu0 %v44_v24, %s429_s2 }
  0x96   :  { %71 = vrot.lane.b32.xlu1 %v465_v2, %s430_s21 }
  0x97   :  { %68 = vrot.lane.b32.xlu0 %v54_v25, %s431_s22 }
 0x100   :  { %v57_v26 = vpop.permute.xlu1 %56 }
 0x101   :  { %v75_v28 = vsel %vm74_vm2, %v32_v16, %v57_v26 }
 0x104   :  { %v65_v27 = vpop.permute.xlu1 %64 }
 0x105   :  { %v61_v29 = vpop.permute.xlu0 %60 }
 0x106   :  { %v77_v30 = vsel %vm76_vm3, %v75_v28, %v61_v29 }
 0x107   :  { %v79_v33 = vsel %vm78_vm4, %v77_v30, %v65_v27 }
 0x108   :  { %v72_v31 = vpop.permute.xlu1 %71 }
 0x109   :  { %v69_v32 = vpop.permute.xlu0 %68 }
 0x10a   :  { %v81_v34 = vsel %vm80_vm5, %v79_v33, %v69_v32 }
 0x10b   :  { %v83_v35 = vsel %vm82_vm6, %v81_v34, %v72_v31 }
 0x10c   :  { %351 = vmatmul.mubr.msk.f32.vlgmr.msra.gmra.mxu0 %vm95_vm7, %v83_v35 }
 0x1cc   :  { %v169_v57 = vpop.f32.mrf.mxu0 }
 0x1cd   :  { %v173_v58 = vmax.f32 %v169_v57, 0.0 }
 0x1ce   :  { %v352_v59 = vpop.f32.mrf.mxu0 }
 0x1cf   :  { %v175_v60 = vmul.f32 %v173_v58, %v527_v22  ;;  %v174_v61 = vmul.f32 %v173_v58, %v520_v18  ;;  %v176_v62 = vmul.f32 %v173_v58, %v522_v19  ;;  %v177_v3 = vmul.f32 %v173_v58, %v529_v23 }
 0x1d1   :  { %183 = vrot.lane.b32.xlu1 %v175_v60, %s431_s22  ;;  %179 = vrot.lane.b32.xlu0 %v174_v61, %s429_s2 }
 0x1d5   :  { %187 = vrot.lane.b32.xlu1 %v176_v62, %s432_s23  ;;  %190 = vrot.lane.b32.xlu0 %v465_v2, %s429_s2 }
 0x243   :  { %v184_v63 = vpop.permute.xlu1 %183  ;;  %v180_v0 = vpop.permute.xlu0 %179 }
 0x244   :  { %v193_v1 = vsel %vm76_vm3, %v173_v58, %v180_v0 }
 0x245   :  { %v194_v6 = vsel %vm80_vm5, %v193_v1, %v184_v63 }
 0x247   :  { %v188_v4 = vpop.permute.xlu1 %187  ;;  %v191_v5 = vpop.permute.xlu0 %190 }
 0x248   :  { %v197_v7 = vsel %vm76_vm3, %v177_v3, %v191_v5  ;;  %v196_v8 = vsel %vm195_vm8, %v194_v6, %v188_v4 }
 0x249   :  { %315 = vmatprep.mubr.msk.f32.mxu1 %vm219_vm9, %v197_v7 }
 0x24a   :  { %291 = vmatmul.mubr.f32.vlgmr.msra.gmra.mxu1 %v196_v8 }
 0x30a   :  { %v292_v2 = vpop.f32.mrf.mxu1 }
 0x30b   :  { %296 = vst [vmem:[#allocation5] sm:$0xff] %v292_v2 }
 0x30c   :  { %v294_v9 = vpop.f32.mrf.mxu1 }
 0x30d   :  { %405 = shalt.err (!%p402_p9)
}
 0x30e   :  { %306 = dma.vmem_to_hbm [thread:$0]  %s304_s24, 128, %s577_s4, [#allocation4]  }
 0x30f   :  { %416 = dma.done.wait [#allocation4], 128  }
 0x310   :  { %417 = vsyncadd [#allocation4], 4294967168 }
 0x311   :  { %310 = vsyncpa [#allocation3], 1 }
 0x312   :  { %311 = vsyncpa [#allocation4], 1 }

</bundles_post_ra>
